<compile_context>
chip_gen: v7x
topology: tpu7x:2x2x1
jax: 0.10.0
libtpu: 0.0.40
codegen_flags: <defaults>
</compile_context>

<pallas_src>
import numpy as np
import jax
import jax.numpy as jnp
from jax.experimental import pallas as pl
from jax.experimental.pallas import tpu as pltpu

BN_EPS = 1e-5
LEAKY_SLOPE = 0.2


# ------------------------------ Pallas kernel --------------------------------

def _make_sage_kernel(n_layers, input_dim, hidden_dim, latent_dim):
    """Fully fused SAGE forward kernel for fixed layer count / dims.

    Kernel inputs (all resident in VMEM, packed to minimize DMA count):
      x_ref    : (N, input_dim)                     node features
      a_ref    : (N, N)                             mean-aggregation operator
      p_ref    : (G, N)                             global_add_pool operator
      wc1_ref  : (2, input_dim, H)                  [Wl_1, Wr_1]
      whh_ref  : (2*(L-1)+2, H, H)                  [Wl_2, Wr_2, ..., w1', w2']
      w3_ref   : (H, latent_dim)                    w3' (BN2 folded in)
      bias_ref : (L+3, max(H, latent_dim))          [bl_1..bl_L, b1', b2', b3']
      out_ref  : (G, latent_dim)
    """
    H = hidden_dim

    def sage_layer(a, h, wl, wr, bl, d_in):
        # Pick association by flop count: N^2*min(D_in,H) + N*D_in*H.
        if d_in > H:
            left = jnp.dot(a, jnp.dot(h, wl, preferred_element_type=jnp.float32),
                           preferred_element_type=jnp.float32)
        else:
            left = jnp.dot(jnp.dot(a, h, preferred_element_type=jnp.float32), wl,
                           preferred_element_type=jnp.float32)
        right = jnp.dot(h, wr, preferred_element_type=jnp.float32)
        return jnp.maximum(left + bl + right, 0.0)     # ReLU; dropout = identity

    def lrelu(z):
        return jnp.where(z >= 0.0, z, LEAKY_SLOPE * z)

    def kernel(x_ref, a_ref, p_ref, wc1_ref, whh_ref, w3_ref, bias_ref, out_ref):
        a = a_ref[...]
        h = x_ref[...]

        # ---- SAGEConv stack -------------------------------------------------
        h = sage_layer(a, h, wc1_ref[0], wc1_ref[1],
                       bias_ref[0:1, :H], input_dim)
        for l in range(1, n_layers):
            wl = whh_ref[2 * (l - 1)]
            wr = whh_ref[2 * (l - 1) + 1]
            h = sage_layer(a, h, wl, wr, bias_ref[l:l + 1, :H], H)

        # ---- global_add_pool as a matmul with the (G, N) pooling operator ---
        z = jnp.dot(p_ref[...], h, preferred_element_type=jnp.float32)  # (G, H)

        # ---- MLP (eval-mode BNs pre-folded into w1'/b1', w2'/b2', w3'/b3') --
        base = 2 * (n_layers - 1)
        for j in range(2):
            w = whh_ref[base + j]
            b = bias_ref[n_layers + j:n_layers + j + 1, :H]
            z = lrelu(jnp.dot(z, w, preferred_element_type=jnp.float32) + b)

        b3 = bias_ref[n_layers + 2:n_layers + 3, :latent_dim]
        z = jnp.dot(z, w3_ref[...], preferred_element_type=jnp.float32) + b3
        out_ref[...] = lrelu(z)

    return kernel


# ------------------------------ host helpers ---------------------------------

def build_mean_adj(edge_index, num_nodes):
    """Dense mean-aggregation operator: A[i, j] = multiplicity(j->i) / in_deg(i)."""
    src = np.asarray(edge_index[0])
    dst = np.asarray(edge_index[1])
    A = np.zeros((num_nodes, num_nodes), np.float32)
    np.add.at(A, (dst, src), 1.0)
    deg = A.sum(axis=1, keepdims=True)
    return A / np.maximum(deg, 1.0)        # nodes with no in-edges aggregate to 0


def build_pool_matrix(batch_vec, num_graphs):
    """global_add_pool operator: P[g, i] = 1 iff node i belongs to graph g."""
    batch_vec = np.asarray(batch_vec)
    P = np.zeros((num_graphs, batch_vec.shape[0]), np.float32)
    P[batch_vec, np.arange(batch_vec.shape[0])] = 1.0
    return P


def _fold_bn_into_linear(gamma, beta, rmean, rvar, w, b):
    """Fold y = BN_eval(x) @ w + b into y = x @ w' + b'."""
    scale = gamma / jnp.sqrt(rvar + BN_EPS)          # (1, D_in)
    shift = beta - rmean * scale                     # (1, D_in)
    w_f = w * scale.reshape(-1, 1)                   # diag(scale) @ w
    b_f = jnp.dot(shift, w) + b                      # (1, D_out)
    return w_f, b_f


def _uniform_linear(key, fin, fout, bias=True):
    """PyTorch-Linear-style init, stored pre-transposed as (D_in, D_out)."""
    kw, kb = jax.random.split(key)
    bound = 1.0 / float(np.sqrt(fin))
    w = jax.random.uniform(kw, (fin, fout), jnp.float32, -bound, bound)
    b = (jax.random.uniform(kb, (1, fout), jnp.float32, -bound, bound)
         if bias else None)
    return w, b


def _bn_params(key, dim):
    """Non-trivial BN parameters / running stats (torch defaults are 1/0/0/1)."""
    k1, k2, k3, k4 = jax.random.split(key, 4)
    gamma = jax.random.uniform(k1, (1, dim), jnp.float32, 0.5, 1.5)
    beta = 0.1 * jax.random.normal(k2, (1, dim), jnp.float32)
    rmean = 0.5 * jax.random.normal(k3, (1, dim), jnp.float32)
    rvar = jax.random.uniform(k4, (1, dim), jnp.float32, 0.5, 1.5)
    return gamma, beta, rmean, rvar


# ------------------------------ SAGE wrapper ----------------------------------

class PallasSAGE:
    def __init__(self, input_dim, hidden_dim, latent_dim, n_layers,
                 key=jax.random.PRNGKey(0)):
        self.input_dim = input_dim
        self.hidden_dim = hidden_dim
        self.latent_dim = latent_dim
        self.n_layers = n_layers

        keys = iter(jax.random.split(key, 16))

        # SAGEConv layers: lin_l (bias) on aggregated neighbors, lin_r (no bias)
        # on the root node features.  Original params kept for the reference.
        self.conv_params = []
        din = input_dim
        for _ in range(n_layers):
            wl, bl = _uniform_linear(next(keys), din, hidden_dim, bias=True)
            wr, _ = _uniform_linear(next(keys), din, hidden_dim, bias=False)
            self.conv_params.append((wl, bl, wr))
            din = hidden_dim

        # BatchNorm after pooling + the two BNs inside the MLP.
        self.bn0 = _bn_params(next(keys), hidden_dim)
        self.bn1 = _bn_params(next(keys), hidden_dim)
        self.bn2 = _bn_params(next(keys), hidden_dim)

        # MLP linears (original, pre-fold — also used by the reference).
        self.w1, self.b1 = _uniform_linear(next(keys), hidden_dim, hidden_dim)
        self.w2, self.b2 = _uniform_linear(next(keys), hidden_dim, hidden_dim)
        self.w3, self.b3 = _uniform_linear(next(keys), hidden_dim, latent_dim)

        # ---- host-side BN -> Linear folding (removes 6 kernel inputs) -------
        w1f, b1f = _fold_bn_into_linear(*self.bn0, self.w1, self.b1)
        w2f, b2f = _fold_bn_into_linear(*self.bn1, self.w2, self.b2)
        w3f, b3f = _fold_bn_into_linear(*self.bn2, self.w3, self.b3)

        # ---- pack parameters into 4 arrays (7 kernel inputs total) ----------
        wl1, _, wr1 = self.conv_params[0]
        self.wc1_pack = jnp.stack([wl1, wr1], axis=0)         # (2, D_in, H)

        whh = []
        for (wl, _, wr) in self.conv_params[1:]:
            whh += [wl, wr]
        whh += [w1f, w2f]
        self.whh_pack = jnp.stack(whh, axis=0)                # (2(L-1)+2, H, H)

        self.w3_f = w3f                                       # (H, latent)

        bias_width = max(hidden_dim, latent_dim)
        rows = [bl for (_, bl, _) in self.conv_params] + [b1f, b2f, b3f]
        self.bias_pack = jnp.concatenate(
            [jnp.pad(r, ((0, 0), (0, bias_width - r.shape[1]))) for r in rows],
            axis=0)                                           # (L+3, bias_width)

        self._kernel = _make_sage_kernel(n_layers, input_dim, hidden_dim,
                                         latent_dim)

    def _cost(self, num_nodes, num_graphs, in_bytes):
        N, G, H, L = num_nodes, num_graphs, self.hidden_dim, self.latent_dim
        flops, din = 0, self.input_dim
        for _ in range(self.n_layers):
            flops += 2 * N * N * min(din, H)      # aggregation matmul
            flops += 2 * N * din * H * 2          # Wl and Wr transforms
            din = H
        flops += 2 * G * N * H                    # global_add_pool
        flops += 2 * G * H * H * 2                # two MLP hidden linears
        flops += 2 * G * H * L                    # final linear
        return pl.CostEstimate(flops=flops, transcendentals=0,
                               bytes_accessed=in_bytes + 4 * G * L)

    def __call__(self, x, A, P):
        num_graphs, num_nodes = P.shape[0], x.shape[0]
        args = [x, A, P, self.wc1_pack, self.whh_pack, self.w3_f, self.bias_pack]
        in_bytes = sum(int(np.prod(a.shape)) * 4 for a in args)

        return pl.pallas_call(
            self._kernel,
            out_shape=jax.ShapeDtypeStruct((num_graphs, self.latent_dim),
                                           jnp.float32),
            in_specs=[pl.BlockSpec(memory_space=pltpu.MemorySpace.VMEM)] * len(args),
            out_specs=pl.BlockSpec(memory_space=pltpu.MemorySpace.VMEM),
            compiler_params=pltpu.CompilerParams(
                vmem_limit_bytes=32 * 1024 * 1024),
            cost_estimate=self._cost(num_nodes, num_graphs, in_bytes),
        )(*args)


# --------------------------- numpy (f64) reference ----------------------------

def reference_forward(model, x, A, P):
    """Un-folded, un-packed reference in float64 (matches the PyTorch forward)."""
    f64 = lambda t: np.asarray(t, dtype=np.float64)

    def lrelu(z):
        return np.where(z >= 0.0, z, LEAKY_SLOPE * z)

    def bn_eval(z, params):
        g, b, rm, rv = (f64(p) for p in params)
        return (z - rm) / np.sqrt(rv + BN_EPS) * g + b

    h, A64, P64 = f64(x), f64(A), f64(P)
    for (wl, bl, wr) in model.conv_params:
        h = np.maximum(A64 @ h @ f64(wl) + f64(bl) + h @ f64(wr), 0.0)
    z = P64 @ h
    z = bn_eval(z, model.bn0)
    z = bn_eval(lrelu(z @ f64(model.w1) + f64(model.b1)), model.bn1)
    z = bn_eval(lrelu(z @ f64(model.w2) + f64(model.b2)), model.bn2)
    z = lrelu(z @ f64(model.w3) + f64(model.b3))
    return z


# --------------------------------- main ---------------------------------------

if __name__ == "__main__":
    input_dim, hidden_dim, latent_dim, n_layers = 16, 32, 16, 3
    nodes_per_graph, num_graphs = 8, 4
    num_nodes = nodes_per_graph * num_graphs

    # Deterministic graph batch: per graph, a bidirectional ring + a hub
    # (every node sends a message to node 0 of its graph).
    src, dst = [], []
    for g in range(num_graphs):
        base = g * nodes_per_graph
        for i in range(nodes_per_graph):
            j = (i + 1) % nodes_per_graph
            src += [base + i, base + j]
            dst += [base + j, base + i]
        for i in range(1, nodes_per_graph):
            src.append(base + i)
            dst.append(base)
    edge_index = np.array([src, dst], dtype=np.int64)
    batch_vec = np.repeat(np.arange(num_graphs), nodes_per_graph)

    A = jnp.asarray(build_mean_adj(edge_index, num_nodes))      # (N, N)
    P = jnp.asarray(build_pool_matrix(batch_vec, num_graphs))   # (G, N)

    root = jax.random.PRNGKey(0)
    k_param, k_x = jax.random.split(root)
    model = PallasSAGE(input_dim, hidden_dim, latent_dim, n_layers, key=k_param)
    x = jax.random.normal(k_x, (num_nodes, input_dim), jnp.float32)

    out = model(x, A, P)
    out = jax.block_until_ready(out)

    out_ref = reference_forward(model, x, A, P)
    assert out.shape == (num_graphs, latent_dim)
    np.testing.assert_allclose(np.asarray(out), out_ref, rtol=1e-3, atol=1e-3)

    print("KERNEL_OK")
</pallas_src>

<mosaic_0001>
module attributes {stable_mosaic.version = 11 : i64} {
  func.func @kernel(%arg0: memref<32x16xf32, #tpu.memory_space<vmem>>, %arg1: memref<32x32xf32, #tpu.memory_space<vmem>>, %arg2: memref<4x32xf32, #tpu.memory_space<vmem>>, %arg3: memref<2x16x32xf32, #tpu.memory_space<vmem>>, %arg4: memref<6x32x32xf32, #tpu.memory_space<vmem>>, %arg5: memref<32x16xf32, #tpu.memory_space<vmem>>, %arg6: memref<6x32xf32, #tpu.memory_space<vmem>>, %arg7: memref<4x16xf32, #tpu.memory_space<vmem>>) attributes {dimension_semantics = [], scalar_prefetch = 0 : i64, scratch_operands = 0 : i64, tpu.core_type = #tpu.core_type<tc>} {
    %c0 = arith.constant 0 : index
    %c0_0 = arith.constant 0 : index
    %0 = vector.load %arg1[%c0, %c0_0] : memref<32x32xf32, #tpu.memory_space<vmem>>, vector<32x32xf32>
    %c0_1 = arith.constant 0 : index
    %c0_2 = arith.constant 0 : index
    %1 = vector.load %arg0[%c0_1, %c0_2] : memref<32x16xf32, #tpu.memory_space<vmem>>, vector<32x16xf32>
    %c0_3 = arith.constant 0 : index
    %c0_4 = arith.constant 0 : index
    %c0_5 = arith.constant 0 : index
    %2 = vector.load %arg3[%c0_3, %c0_4, %c0_5] : memref<2x16x32xf32, #tpu.memory_space<vmem>>, vector<1x16x32xf32>
    %3 = vector.shape_cast %2 : vector<1x16x32xf32> to vector<16x32xf32>
    %c1 = arith.constant 1 : index
    %c0_6 = arith.constant 0 : index
    %c0_7 = arith.constant 0 : index
    %4 = vector.load %arg3[%c1, %c0_6, %c0_7] : memref<2x16x32xf32, #tpu.memory_space<vmem>>, vector<1x16x32xf32>
    %5 = vector.shape_cast %4 : vector<1x16x32xf32> to vector<16x32xf32>
    %c0_8 = arith.constant 0 : index
    %c0_9 = arith.constant 0 : index
    %6 = vector.load %arg6[%c0_8, %c0_9] : memref<6x32xf32, #tpu.memory_space<vmem>>, vector<1x32xf32>
    %cst = arith.constant dense<0.000000e+00> : vector<32x16xf32>
    %7 = tpu.matmul %0, %1, %cst {dimension_numbers = #tpu.dot_dimension_numbers<[1], [0], [0], [1], [0, 0, 1, 1], [], []>} : vector<32x32xf32>, vector<32x16xf32>, vector<32x16xf32> -> vector<32x16xf32>
    %cst_10 = arith.constant dense<0.000000e+00> : vector<32x32xf32>
    %8 = tpu.matmul %7, %3, %cst_10 {dimension_numbers = #tpu.dot_dimension_numbers<[1], [0], [0], [1], [0, 0, 1, 1], [], []>} : vector<32x16xf32>, vector<16x32xf32>, vector<32x32xf32> -> vector<32x32xf32>
    %cst_11 = arith.constant dense<0.000000e+00> : vector<32x32xf32>
    %9 = tpu.matmul %1, %5, %cst_11 {dimension_numbers = #tpu.dot_dimension_numbers<[1], [0], [0], [1], [0, 0, 1, 1], [], []>} : vector<32x16xf32>, vector<16x32xf32>, vector<32x32xf32> -> vector<32x32xf32>
    %10 = vector.broadcast %6 : vector<1x32xf32> to vector<32x32xf32>
    %11 = arith.addf %8, %10 : vector<32x32xf32>
    %12 = arith.addf %11, %9 : vector<32x32xf32>
    %cst_12 = arith.constant 0.000000e+00 : f32
    %13 = vector.broadcast %cst_12 : f32 to vector<32x32xf32>
    %14 = arith.maximumf %12, %13 : vector<32x32xf32>
    %c0_13 = arith.constant 0 : index
    %c0_14 = arith.constant 0 : index
    %c0_15 = arith.constant 0 : index
    %15 = vector.load %arg4[%c0_13, %c0_14, %c0_15] : memref<6x32x32xf32, #tpu.memory_space<vmem>>, vector<1x32x32xf32>
    %16 = vector.shape_cast %15 : vector<1x32x32xf32> to vector<32x32xf32>
    %c1_16 = arith.constant 1 : index
    %c0_17 = arith.constant 0 : index
    %c0_18 = arith.constant 0 : index
    %17 = vector.load %arg4[%c1_16, %c0_17, %c0_18] : memref<6x32x32xf32, #tpu.memory_space<vmem>>, vector<1x32x32xf32>
    %18 = vector.shape_cast %17 : vector<1x32x32xf32> to vector<32x32xf32>
    %c1_19 = arith.constant 1 : index
    %c0_20 = arith.constant 0 : index
    %19 = vector.load %arg6[%c1_19, %c0_20] : memref<6x32xf32, #tpu.memory_space<vmem>>, vector<1x32xf32>
    %cst_21 = arith.constant dense<0.000000e+00> : vector<32x32xf32>
    %20 = tpu.matmul %0, %14, %cst_21 {dimension_numbers = #tpu.dot_dimension_numbers<[1], [0], [0], [1], [0, 0, 1, 1], [], []>} : vector<32x32xf32>, vector<32x32xf32>, vector<32x32xf32> -> vector<32x32xf32>
    %cst_22 = arith.constant dense<0.000000e+00> : vector<32x32xf32>
    %21 = tpu.matmul %20, %16, %cst_22 {dimension_numbers = #tpu.dot_dimension_numbers<[1], [0], [0], [1], [0, 0, 1, 1], [], []>} : vector<32x32xf32>, vector<32x32xf32>, vector<32x32xf32> -> vector<32x32xf32>
    %cst_23 = arith.constant dense<0.000000e+00> : vector<32x32xf32>
    %22 = tpu.matmul %14, %18, %cst_23 {dimension_numbers = #tpu.dot_dimension_numbers<[1], [0], [0], [1], [0, 0, 1, 1], [], []>} : vector<32x32xf32>, vector<32x32xf32>, vector<32x32xf32> -> vector<32x32xf32>
    %23 = vector.broadcast %19 : vector<1x32xf32> to vector<32x32xf32>
    %24 = arith.addf %21, %23 : vector<32x32xf32>
    %25 = arith.addf %24, %22 : vector<32x32xf32>
    %cst_24 = arith.constant 0.000000e+00 : f32
    %26 = vector.broadcast %cst_24 : f32 to vector<32x32xf32>
    %27 = arith.maximumf %25, %26 : vector<32x32xf32>
    %c2 = arith.constant 2 : index
    %c0_25 = arith.constant 0 : index
    %c0_26 = arith.constant 0 : index
    %28 = vector.load %arg4[%c2, %c0_25, %c0_26] : memref<6x32x32xf32, #tpu.memory_space<vmem>>, vector<1x32x32xf32>
    %29 = vector.shape_cast %28 : vector<1x32x32xf32> to vector<32x32xf32>
    %c3 = arith.constant 3 : index
    %c0_27 = arith.constant 0 : index
    %c0_28 = arith.constant 0 : index
    %30 = vector.load %arg4[%c3, %c0_27, %c0_28] : memref<6x32x32xf32, #tpu.memory_space<vmem>>, vector<1x32x32xf32>
    %31 = vector.shape_cast %30 : vector<1x32x32xf32> to vector<32x32xf32>
    %c2_29 = arith.constant 2 : index
    %c0_30 = arith.constant 0 : index
    %32 = vector.load %arg6[%c2_29, %c0_30] : memref<6x32xf32, #tpu.memory_space<vmem>>, vector<1x32xf32>
    %cst_31 = arith.constant dense<0.000000e+00> : vector<32x32xf32>
    %33 = tpu.matmul %0, %27, %cst_31 {dimension_numbers = #tpu.dot_dimension_numbers<[1], [0], [0], [1], [0, 0, 1, 1], [], []>} : vector<32x32xf32>, vector<32x32xf32>, vector<32x32xf32> -> vector<32x32xf32>
    %cst_32 = arith.constant dense<0.000000e+00> : vector<32x32xf32>
    %34 = tpu.matmul %33, %29, %cst_32 {dimension_numbers = #tpu.dot_dimension_numbers<[1], [0], [0], [1], [0, 0, 1, 1], [], []>} : vector<32x32xf32>, vector<32x32xf32>, vector<32x32xf32> -> vector<32x32xf32>
    %cst_33 = arith.constant dense<0.000000e+00> : vector<32x32xf32>
    %35 = tpu.matmul %27, %31, %cst_33 {dimension_numbers = #tpu.dot_dimension_numbers<[1], [0], [0], [1], [0, 0, 1, 1], [], []>} : vector<32x32xf32>, vector<32x32xf32>, vector<32x32xf32> -> vector<32x32xf32>
    %36 = vector.broadcast %32 : vector<1x32xf32> to vector<32x32xf32>
    %37 = arith.addf %34, %36 : vector<32x32xf32>
    %38 = arith.addf %37, %35 : vector<32x32xf32>
    %cst_34 = arith.constant 0.000000e+00 : f32
    %39 = vector.broadcast %cst_34 : f32 to vector<32x32xf32>
    %40 = arith.maximumf %38, %39 : vector<32x32xf32>
    %c0_35 = arith.constant 0 : index
    %c0_36 = arith.constant 0 : index
    %41 = vector.load %arg2[%c0_35, %c0_36] : memref<4x32xf32, #tpu.memory_space<vmem>>, vector<4x32xf32>
    %cst_37 = arith.constant dense<0.000000e+00> : vector<4x32xf32>
    %42 = tpu.matmul %41, %40, %cst_37 {dimension_numbers = #tpu.dot_dimension_numbers<[1], [0], [0], [1], [0, 0, 1, 1], [], []>} : vector<4x32xf32>, vector<32x32xf32>, vector<4x32xf32> -> vector<4x32xf32>
    %c4 = arith.constant 4 : index
    %c0_38 = arith.constant 0 : index
    %c0_39 = arith.constant 0 : index
    %43 = vector.load %arg4[%c4, %c0_38, %c0_39] : memref<6x32x32xf32, #tpu.memory_space<vmem>>, vector<1x32x32xf32>
    %44 = vector.shape_cast %43 : vector<1x32x32xf32> to vector<32x32xf32>
    %c3_40 = arith.constant 3 : index
    %c0_41 = arith.constant 0 : index
    %45 = vector.load %arg6[%c3_40, %c0_41] : memref<6x32xf32, #tpu.memory_space<vmem>>, vector<1x32xf32>
    %cst_42 = arith.constant dense<0.000000e+00> : vector<4x32xf32>
    %46 = tpu.matmul %42, %44, %cst_42 {dimension_numbers = #tpu.dot_dimension_numbers<[1], [0], [0], [1], [0, 0, 1, 1], [], []>} : vector<4x32xf32>, vector<32x32xf32>, vector<4x32xf32> -> vector<4x32xf32>
    %47 = vector.broadcast %45 : vector<1x32xf32> to vector<4x32xf32>
    %48 = arith.addf %46, %47 : vector<4x32xf32>
    %cst_43 = arith.constant 0.000000e+00 : f32
    %49 = vector.broadcast %cst_43 : f32 to vector<4x32xf32>
    %50 = arith.cmpf oge, %48, %49 : vector<4x32xf32>
    %cst_44 = arith.constant 2.000000e-01 : f32
    %51 = vector.broadcast %cst_44 : f32 to vector<4x32xf32>
    %52 = arith.mulf %51, %48 : vector<4x32xf32>
    %53 = arith.select %50, %48, %52 : vector<4x32xi1>, vector<4x32xf32>
    %c5 = arith.constant 5 : index
    %c0_45 = arith.constant 0 : index
    %c0_46 = arith.constant 0 : index
    %54 = vector.load %arg4[%c5, %c0_45, %c0_46] : memref<6x32x32xf32, #tpu.memory_space<vmem>>, vector<1x32x32xf32>
    %55 = vector.shape_cast %54 : vector<1x32x32xf32> to vector<32x32xf32>
    %c4_47 = arith.constant 4 : index
    %c0_48 = arith.constant 0 : index
    %56 = vector.load %arg6[%c4_47, %c0_48] : memref<6x32xf32, #tpu.memory_space<vmem>>, vector<1x32xf32>
    %cst_49 = arith.constant dense<0.000000e+00> : vector<4x32xf32>
    %57 = tpu.matmul %53, %55, %cst_49 {dimension_numbers = #tpu.dot_dimension_numbers<[1], [0], [0], [1], [0, 0, 1, 1], [], []>} : vector<4x32xf32>, vector<32x32xf32>, vector<4x32xf32> -> vector<4x32xf32>
    %58 = vector.broadcast %56 : vector<1x32xf32> to vector<4x32xf32>
    %59 = arith.addf %57, %58 : vector<4x32xf32>
    %cst_50 = arith.constant 0.000000e+00 : f32
    %60 = vector.broadcast %cst_50 : f32 to vector<4x32xf32>
    %61 = arith.cmpf oge, %59, %60 : vector<4x32xf32>
    %cst_51 = arith.constant 2.000000e-01 : f32
    %62 = vector.broadcast %cst_51 : f32 to vector<4x32xf32>
    %63 = arith.mulf %62, %59 : vector<4x32xf32>
    %64 = arith.select %61, %59, %63 : vector<4x32xi1>, vector<4x32xf32>
    %c5_52 = arith.constant 5 : index
    %c0_53 = arith.constant 0 : index
    %65 = vector.load %arg6[%c5_52, %c0_53] : memref<6x32xf32, #tpu.memory_space<vmem>>, vector<1x16xf32>
    %c0_54 = arith.constant 0 : index
    %c0_55 = arith.constant 0 : index
    %66 = vector.load %arg5[%c0_54, %c0_55] : memref<32x16xf32, #tpu.memory_space<vmem>>, vector<32x16xf32>
    %cst_56 = arith.constant dense<0.000000e+00> : vector<4x16xf32>
    %67 = tpu.matmul %64, %66, %cst_56 {dimension_numbers = #tpu.dot_dimension_numbers<[1], [0], [0], [1], [0, 0, 1, 1], [], []>} : vector<4x32xf32>, vector<32x16xf32>, vector<4x16xf32> -> vector<4x16xf32>
    %68 = vector.broadcast %65 : vector<1x16xf32> to vector<4x16xf32>
    %69 = arith.addf %67, %68 : vector<4x16xf32>
    %cst_57 = arith.constant 0.000000e+00 : f32
    %70 = vector.broadcast %cst_57 : f32 to vector<4x16xf32>
    %71 = arith.cmpf oge, %69, %70 : vector<4x16xf32>
    %cst_58 = arith.constant 2.000000e-01 : f32
    %72 = vector.broadcast %cst_58 : f32 to vector<4x16xf32>
    %73 = arith.mulf %72, %69 : vector<4x16xf32>
    %74 = arith.select %71, %69, %73 : vector<4x16xi1>, vector<4x16xf32>
    %c0_59 = arith.constant 0 : index
    %c0_60 = arith.constant 0 : index
    %75 = vector.load %arg7[%c0_59, %c0_60] : memref<4x16xf32, #tpu.memory_space<vmem>>, vector<4x16xf32>
    tpu.vector_store %arg7[%c0_59, %c0_60], %74 {strides = array<i32>} : memref<4x16xf32, #tpu.memory_space<vmem>>, vector<4x16xf32>,
    return
  }
}

</mosaic_0001>

<bundles_post_ra>
// kernel: tpu_custom_call.1
= control target key start
LH: loop header
LB: loop body
LE: loop exit
PB: predicated region body
PF: predicated region fallthrough
CT: control target
= control target key end

     0   :  { %12 = vsyncpa [#allocation3], 0  ;;  %s1980_s0 = inlined_call_operand.vmem [shape: f32[32,16], index: 0, kind: input, shape index: {}]   ;;  %s1981_s1 = inlined_call_operand.vmem [shape: f32[32,32], index: 1, kind: input, shape index: {}]   ;;  %s1982_s2 = inlined_call_operand.vmem [shape: f32[4,32], index: 2, kind: input, shape index: {}]   ;;  %s1983_s3 = inlined_call_operand.vmem [shape: f32[2,16,32], index: 3, kind: input, shape index: {}]   ;;  %s1984_s4 = inlined_call_operand.hbm [shape: f32[6,32,32], index: 4, kind: input, shape index: {}]   ;;  %s1985_s5 = inlined_call_operand.vmem [shape: f32[32,16], index: 5, kind: input, shape index: {}]   ;;  %s1986_s6 = inlined_call_operand.vmem [shape: f32[6,32], index: 6, kind: input, shape index: {}]   ;;  %s1987_s7 = inlined_call_operand.hbm [shape: f32[4,16], index: 7, kind: output, shape index: {}]  }
   0x1   :  { %13 = vsyncpa [#allocation4], 0  ;;  %s1776_s24 = smov [#allocation2]   ;;  %s1728_s28 = scalar_lea.hbm %s1984_s4, 3072 }
   0x2   :  { %s27_s25 = sshll.u32 %s1776_s24, 4  ;;  %p1729_p0 = scmp.ne.s32.totalorder %s1984_s4, %s1728_s28  ;;  %s28_s25 = int_to_ptr.vmem [resolvable:$true] %s27_s25 }
   0x3   :  { %p1732_p1 = scmp.lt.u32.totalorder %s1728_s28, %s1984_s4 }
   0x5   :  { %p1734_p2 = pnand %p1732_p1, %p1729_p0 }
   0x7   :  { %1737 = shalt.err (!%p1734_p2)
}
   0x8   :  { %s1738_s10 = scalar_lea.vmem %s28_s25, 3072  ;;  %p1743_p4 = scmp.lt.s32.totalorder %s28_s25, %s28_s25 }
   0x9   :  { %p1739_p3 = scmp.ne.s32.totalorder %s28_s25, %s1738_s10  ;;  %p1744_p5 = scmp.lt.s32.totalorder %s1738_s10, %s1738_s10 }
   0xb   :  { %p1745_p6 = por %p1744_p5, %p1743_p4 }
   0xd   :  { %p1746_p7 = pnand %p1745_p6, %p1739_p3 }
   0xf   :  { %1749 = shalt.err (!%p1746_p7)
}
  0x10   :  { %s1777_s11 = smov 128   ;;  %s1778_s12 = smov 8  }
  0x11   :  { %33 = dma.hbm_to_vmem [thread:$0]  %s1984_s4, 3072, %s28_s25, [#allocation3], %s1777_s11, %s1777_s11, %s1778_s12  }
  0x12   :  { %1772 = dma.done.wait [#allocation3], 3072  }
  0x13   :  { %1773 = vsyncadd [#allocation3], 4294964224  ;;  %vm153_vm0 = vcmask 130048   ;;  %vm55_vm1 = vcmask 261120   ;;  %v45_v0 = vld [vmem:[%s1980_s0] sm:$0xff]  ;;  %v46_v1 = vld [vmem:[%s1980_s0 + $0x8] sm:$0xff] }
  0x14   :  { %v47_v2 = vld [vmem:[%s1980_s0 + $0x10] sm:$0xff]  ;;  %v1609_v3 = vpack.c.bf16 %v46_v1, %v45_v0  ;;  %v48_v4 = vld [vmem:[%s1980_s0 + $0x18] sm:$0xff]  ;;  %v1850_v5 = vld [vmem:[%s1981_s1] sm:$0xff]  ;;  %1465 = vmatprep.mubr.msk.f32.mxu1 %vm153_vm0, %v45_v0  ;;  %vm1780_vm2 = vmmov 0   ;;  %vm1294_vm6 = vcmask 125952  }
  0x15   :  { %v1613_v6 = vpack.c.bf16 %v48_v4, %v47_v2  ;;  %1455 = vmatprep.mubr.msk.f32.mxu0 %vm55_vm1, %v1850_v5  ;;  %v1311_v7 = vld [vmem:[%s1983_s3 + $0x10] sm:$0xff]  ;;  %v1312_v8 = vld [vmem:[%s1983_s3 + $0x18] sm:$0xff]  ;;  %v49_v9 = vld [vmem:[%s1983_s3] sm:$0xff] }
  0x16   :  { %1610 = vmatprep.subr.bf16.mxu0 %v1609_v3  ;;  %v50_v10 = vld [vmem:[%s1983_s3 + $0x8] sm:$0xff]  ;;  %v1617_v11 = vpack.c.bf16 %v1312_v8, %v1311_v7  ;;  %v1875_v14 = vld [vmem:[%s1981_s1 + $0x10] sm:$0xff]  ;;  %v1885_v15 = vld [vmem:[%s1981_s1 + $0x18] sm:$0xff] }
  0x17   :  { %1612 = vmatpush3.bf16.msra.mxu0 %v1609_v3  ;;  %v1621_v12 = vpack.c.bf16 %v50_v10, %v49_v9  ;;  %v1870_v13 = vld [vmem:[%s1981_s1 + $0x8] sm:$0xff]  ;;  %v365_v16 = vld [vmem:[#allocation2 + $0x20] sm:$0xff]  ;;  %v367_v23 = vld [vmem:[#allocation2 + $0x30] sm:$0xff] }
  0x18   :  { %1614 = vmatprep.subr.bf16.mxu0 %v1613_v6  ;;  %1618 = vmatprep.subr.bf16.mxu1 %v1617_v11  ;;  %v366_v17 = vld [vmem:[#allocation2 + $0x28] sm:$0xff]  ;;  %v368_v24 = vld [vmem:[#allocation2 + $0x38] sm:$0xff]  ;;  %v360_v26 = vld [vmem:[#allocation2] sm:$0xff] }
  0x19   :  { %1620 = vmatpush3.bf16.msra.mxu1 %v1617_v11  ;;  %v1633_v18 = vpack.c.bf16 %v366_v17, %v365_v16  ;;  %v1637_v25 = vpack.c.bf16 %v368_v24, %v367_v23  ;;  %v361_v27 = vld [vmem:[#allocation2 + $0x8] sm:$0xff]  ;;  %v1321_v29 = vld [vmem:[%s1986_s6] ss:$0 sm:$0xff]  ;;  %v362_v34 = vld [vmem:[#allocation2 + $0x10] sm:$0xff] }
  0x1a   :  { %1622 = vmatprep.subr.bf16.mxu1 %v1621_v12  ;;  %v1641_v28 = vpack.c.bf16 %v361_v27, %v360_v26  ;;  %v363_v35 = vld [vmem:[#allocation2 + $0x18] sm:$0xff]  ;;  %v1334_v51 = vld [vmem:[%s1986_s6 + $0x1] ss:$0 sm:$0xff]  ;;  %v663_v9 = vld [vmem:[#allocation2 + $0x48] sm:$0xff] }
  0x1b   :  { %1616 = vmatpush3.bf16.msra.mxu0 %v1613_v6  ;;  %v1645_v41 = vpack.c.bf16 %v363_v35, %v362_v34  ;;  %v667_v0 = vld [vmem:[#allocation2 + $0x60] sm:$0xff]  ;;  %v670_v6 = vld [vmem:[#allocation2 + $0x78] sm:$0xff]  ;;  %v664_v11 = vld [vmem:[#allocation2 + $0x50] sm:$0xff] }
  0x1c   :  { %1466 = vmatmul.mubr.msk.f32.vlgmr.msra.gmra.mrb[0].mxu1 %vm153_vm0, %v46_v1  ;;  %v668_v1 = vld [vmem:[#allocation2 + $0x68] sm:$0xff]  ;;  %v662_v8 = vld [vmem:[#allocation2 + $0x40] sm:$0xff] }
  0x1d   :  { %1624 = vmatpush3.bf16.msra.mxu1 %v1621_v12  ;;  %1468 = vmatprep.mubr.msk.f32.mxu1 %vm153_vm0, %v47_v2  ;;  %v1665_v10 = vpack.c.bf16 %v663_v9, %v662_v8  ;;  %v665_v12 = vld [vmem:[#allocation2 + $0x58] sm:$0xff]  ;;  %v1038_v34 = vld [vmem:[#allocation2 + $0x80] sm:$0xff]  ;;  %v1039_v35 = vld [vmem:[#allocation2 + $0x88] sm:$0xff] }
  0x1e   :  { %1456 = vmatmul.mubr.msk.f32.vlgmr.msra.gmra.mrb[0].mxu0 %vm55_vm1, %v1870_v13  ;;  %1634 = vmatprep.subr.bf16.mxu1 %v1633_v18  ;;  %v1669_v16 = vpack.c.bf16 %v665_v12, %v664_v11 }
  0x1f   :  { %1458 = vmatprep.mubr.msk.f32.mxu0 %vm55_vm1, %v1875_v14 }
  0x20   :  { %1469 = vmatmul.mubr.msk.f32.gmra.mrb[2].mxu1 %vm153_vm0, %v48_v4  ;;  %v1657_v4 = vpack.c.bf16 %v668_v1, %v667_v0 }
  0x22   :  { %1459 = vmatmul.mubr.msk.f32.gmra.mrb[2].mxu0 %vm55_vm1, %v1885_v15 }
  0x23   :  { %1489 = vmatprep.mubr.msk.f32.mxu0 %vm55_vm1, %v1850_v5 }
  0xf1   :  { %v1457_v19 = vpop.f32.mrb[0].mxu0 }
  0xf2   :  { %v134_v20 = vpop.f32.mrb[1].mxu0 }
  0xf3   :  { %1475 = vmatprep.mubr.msk.f32.mxu1 %vm153_vm0, %v134_v20  ;;  %v1347_v20 = vld [vmem:[%s1986_s6 + $0x2] ss:$0 sm:$0xff] }
  0xf4   :  { %1476 = vmatmul.mubr.msk.f32.vlgmr.msra.gmra.mrb[0].mxu1 %vm153_vm0, %v1457_v19  ;;  %v1781_v19 = vmov 0.0  }
  0xf5   :  { %v1460_v21 = vpop.f32.mrb[2].mxu0  ;;  %1636 = vmatpush3.bf16.msra.mxu1 %v1633_v18  ;;  %v1779_v18 = vmov 0.0|0.0  }
  0xf6   :  { %v144_v22 = vpop.f32.mrb[3].mxu0  ;;  %1638 = vmatprep.subr.bf16.mxu1 %v1637_v25 }
  0xf7   :  { %1478 = vmatprep.mubr.msk.f32.mxu1 %vm153_vm0, %v144_v22 }
  0xf8   :  { %1479 = vmatmul.mubr.msk.f32.gmra.mrb[2].mxu1 %vm153_vm0, %v1460_v21 }
  0xf9   :  { %1640 = vmatpush3.bf16.msra.mxu1 %v1637_v25 }
  0xfa   :  { %1642 = vmatprep.subr.bf16.mxu1 %v1641_v28 }
 0x1c7   :  { %v1477_v30 = vpop.f32.mrb[0].mxu1 }
 0x1c8   :  { %v339_v31 = vadd.f32 %v1477_v30, %v1321_v29  ;;  %v333_v32 = vpop.f32.mrb[1].mxu1 }
 0x1c9   :  { %v334_v33 = vadd.f32 %v1321_v29, %v333_v32 }
 0x1ca   :  { %v357_v36 = vmax.f32 %v339_v31, 0.0 }
 0x1cb   :  { %v356_v37 = vmax.f32 %v334_v33, 0.0  ;;  %v1480_v38 = vpop.f32.mrb[2].mxu1 }
 0x1cc   :  { %v349_v39 = vadd.f32 %v1480_v38, %v1321_v29  ;;  %v343_v40 = vpop.f32.mrb[3].mxu1  ;;  %v1680_v38 = vpack.c.bf16 %v1039_v35, %v1038_v34 }
 0x1cd   :  { %v1625_v42 = vpack.c.bf16 %v357_v36, %v356_v37  ;;  %v344_v43 = vadd.f32 %v1321_v29, %v343_v40  ;;  %1503 = vmatprep.mubr.msk.f32.mxu1 %vm55_vm1, %v356_v37  ;;  %v963_v37 = vld [vmem:[%s1982_s2] sm:$0xf]  ;;  %v1041_v40 = vld [vmem:[#allocation2 + $0x98] sm:$0xff] }
 0x1ce   :  { %v359_v44 = vmax.f32 %v349_v39, 0.0  ;;  %1504 = vmatmul.mubr.msk.f32.vlgmr.msra.gmra.mrb[4].mxu1 %vm55_vm1, %v357_v36  ;;  %v1040_v39 = vld [vmem:[#allocation2 + $0x90] sm:$0xff] }
 0x1cf   :  { %v358_v45 = vmax.f32 %v344_v43, 0.0  ;;  %1626 = vmatprep.subr.bf16.mxu0 %v1625_v42  ;;  %1644 = vmatpush3.bf16.msra.mxu1 %v1641_v28  ;;  %v1125_v43 = vld [vmem:[#allocation2 + $0xa8] sm:$0xff] }
 0x1d0   :  { %1628 = vmatpush3.bf16.msra.mxu0 %v1625_v42  ;;  %1646 = vmatprep.subr.bf16.mxu1 %v1645_v41  ;;  %v1124_v42 = vld [vmem:[#allocation2 + $0xa0] sm:$0xff] }
 0x1d1   :  { %v1629_v46 = vpack.c.bf16 %v359_v44, %v358_v45  ;;  %1506 = vmatprep.mubr.msk.f32.mxu1 %vm55_vm1, %v358_v45 }
 0x1d2   :  { %1507 = vmatmul.mubr.msk.f32.gmra.mrb[6].mxu1 %vm55_vm1, %v359_v44  ;;  %v1686_v44 = vpack.c.bf16 %v1125_v43, %v1124_v42 }
 0x1d3   :  { %1630 = vmatprep.subr.bf16.mxu0 %v1629_v46  ;;  %1648 = vmatpush3.bf16.msra.mxu1 %v1645_v41  ;;  %v1683_v41 = vpack.c.bf16 %v1041_v40, %v1040_v39 }
 0x1d4   :  { %1632 = vmatpush3.bf16.msra.mxu0 %v1629_v46  ;;  %1673 = vmatprep.subr.bf16.mxu1 %v1779_v18 }
 0x1d7   :  { %1490 = vmatmul.mubr.msk.f32.vlgmr.msra.gmra.mrb[4].mxu0 %vm55_vm1, %v1870_v13 }
 0x1d8   :  { %1492 = vmatprep.mubr.msk.f32.mxu0 %vm55_vm1, %v1875_v14 }
 0x1db   :  { %1493 = vmatmul.mubr.msk.f32.gmra.mrb[6].mxu0 %vm55_vm1, %v1885_v15 }
 0x1dc   :  { %1531 = vmatprep.mubr.msk.f32.mxu0 %vm55_vm1, %v1850_v5  ;;  %v669_v5 = vld [vmem:[#allocation2 + $0x70] sm:$0xff] }
 0x1dd   :  { %v1661_v7 = vpack.c.bf16 %v670_v6, %v669_v5 }
 0x2aa   :  { %v1491_v47 = vpop.f32.mrb[4].mxu0 }
 0x2ab   :  { %v436_v48 = vpop.f32.mrb[5].mxu0 }
 0x2ac   :  { %1517 = vmatprep.mubr.msk.f32.mxu1 %vm55_vm1, %v436_v48  ;;  %v1127_v48 = vld [vmem:[#allocation2 + $0xb8] sm:$0xff] }
 0x2ad   :  { %1518 = vmatmul.mubr.msk.f32.vlgmr.msra.gmra.mrb[4].mxu1 %vm55_vm1, %v1491_v47  ;;  %v1126_v47 = vld [vmem:[#allocation2 + $0xb0] sm:$0xff] }
 0x2ae   :  { %v1494_v49 = vpop.f32.mrb[6].mxu0 }
 0x2af   :  { %v446_v50 = vpop.f32.mrb[7].mxu0 }
 0x2b0   :  { %1520 = vmatprep.mubr.msk.f32.mxu1 %vm55_vm1, %v446_v50  ;;  %v1210_v50 = vld [vmem:[%s1985_s5] sm:$0xff] }
 0x2b1   :  { %1521 = vmatmul.mubr.msk.f32.gmra.mrb[6].mxu1 %vm55_vm1, %v1494_v49  ;;  %v1689_v49 = vpack.c.bf16 %v1127_v48, %v1126_v47 }
 0x2b2   :  { %1573 = vmatprep.mubr.msk.f32.mxu1 %vm1780_vm2, %v1781_v19 }
 0x380   :  { %v1519_v52 = vpop.f32.mrb[4].mxu1 }
 0x381   :  { %v640_v53 = vadd.f32 %v1519_v52, %v1334_v51  ;;  %v634_v54 = vpop.f32.mrb[5].mxu1 }
 0x382   :  { %v635_v55 = vadd.f32 %v1334_v51, %v634_v54 }
 0x383   :  { %v658_v56 = vmax.f32 %v640_v53, 0.0  ;;  %v1353_v53 = vld [vmem:[%s1986_s6 + $0x3] ss:$0 sm:$0xff] }
 0x384   :  { %v657_v57 = vmax.f32 %v635_v55, 0.0  ;;  %v1522_v58 = vpop.f32.mrb[6].mxu1 }
 0x385   :  { %v650_v59 = vadd.f32 %v1522_v58, %v1334_v51  ;;  %v644_v60 = vpop.f32.mrb[7].mxu1 }
 0x386   :  { %v1649_v61 = vpack.c.bf16 %v658_v56, %v657_v57  ;;  %v645_v62 = vadd.f32 %v1334_v51, %v644_v60  ;;  %v1211_v51 = vld [vmem:[%s1985_s5 + $0x8] sm:$0xff]  ;;  %v1213_v60 = vld [vmem:[%s1985_s5 + $0x18] sm:$0xff] }
 0x387   :  { %v660_v63 = vmax.f32 %v650_v59, 0.0  ;;  %v1692_v52 = vpack.c.bf16 %v1211_v51, %v1210_v50  ;;  %v1212_v59 = vld [vmem:[%s1985_s5 + $0x10] sm:$0xff]  ;;  %s1782_s5 = smov [#allocation5]  }
 0x388   :  { %v659_v2 = vmax.f32 %v645_v62, 0.0  ;;  %1650 = vmatprep.subr.bf16.mxu0 %v1649_v61  ;;  %v1355_v62 = vld [vmem:[%s1986_s6 + $0x4] ss:$0 sm:$0xff]  ;;  %s1302_s8 = sshll.u32 %s1782_s5, 4  ;;  %s1303_s8 = int_to_ptr.vmem [resolvable:$true] %s1302_s8 }
 0x389   :  { %1652 = vmatpush3.bf16.msra.mxu0 %v1649_v61  ;;  %v1695_v61 = vpack.c.bf16 %v1213_v60, %v1212_v59  ;;  %s1750_s9 = scalar_lea.vmem %s1303_s8, 64  ;;  %p1755_p9 = scmp.lt.s32.totalorder %s1303_s8, %s1303_s8 }
 0x38a   :  { %v1653_v3 = vpack.c.bf16 %v660_v63, %v659_v2  ;;  %p1751_p8 = scmp.ne.s32.totalorder %s1303_s8, %s1750_s9  ;;  %p1756_p10 = scmp.lt.s32.totalorder %s1750_s9, %s1750_s9 }
 0x38c   :  { %1654 = vmatprep.subr.bf16.mxu0 %v1653_v3  ;;  %p1757_p11 = por %p1756_p10, %p1755_p9 }
 0x38d   :  { %1656 = vmatpush3.bf16.msra.mxu0 %v1653_v3 }
 0x38e   :  { %1658 = vmatprep.subr.bf16.mxu0 %v1657_v4  ;;  %p1758_p12 = pnand %p1757_p11, %p1751_p8 }
 0x390   :  { %1532 = vmatmul.mubr.msk.f32.vlgmr.msra.gmra.mrb[8].mxu0 %vm55_vm1, %v1870_v13 }
 0x391   :  { %1660 = vmatpush3.bf16.msra.mxu0 %v1657_v4  ;;  %1534 = vmatprep.mubr.msk.f32.mxu0 %vm55_vm1, %v1875_v14  ;;  %v1357_v4 = vld [vmem:[%s1986_s6 + $0x5] ss:$0 sm:$0xff] }
 0x392   :  { %1662 = vmatprep.subr.bf16.mxu0 %v1661_v7 }
 0x394   :  { %1535 = vmatmul.mubr.msk.f32.gmra.mrb[10].mxu0 %vm55_vm1, %v1885_v15 }
 0x395   :  { %1664 = vmatpush3.bf16.msra.mxu0 %v1661_v7  ;;  %1545 = vmatprep.mubr.msk.f32.mxu0 %vm55_vm1, %v657_v57 }
 0x396   :  { %1666 = vmatprep.subr.bf16.mxu0 %v1665_v10 }
 0x398   :  { %1546 = vmatmul.mubr.msk.f32.vlgmr.msra.gmra.mrb[12].mxu0 %vm55_vm1, %v658_v56 }
 0x399   :  { %1548 = vmatprep.mubr.msk.f32.mxu0 %vm55_vm1, %v659_v2  ;;  %1668 = vmatpush3.bf16.msra.mxu0 %v1665_v10 }
 0x39a   :  { %1670 = vmatprep.subr.bf16.mxu0 %v1669_v16 }
 0x39c   :  { %1549 = vmatmul.mubr.msk.f32.gmra.mrb[14].mxu0 %vm55_vm1, %v660_v63 }
 0x39d   :  { %1672 = vmatpush3.bf16.msra.mxu0 %v1669_v16 }
 0x39e   :  { %1685 = vmatprep.subr.bf16.mxu0 %v1779_v18 }
 0x463   :  { %v1533_v13 = vpop.f32.mrb[8].mxu0 }
 0x464   :  { %v738_v14 = vpop.f32.mrb[9].mxu0 }
 0x465   :  { %1559 = vmatprep.mubr.msk.f32.mxu0 %vm55_vm1, %v738_v14 }
 0x466   :  { %1560 = vmatmul.mubr.msk.f32.vlgmr.msra.gmra.mrb[12].mxu0 %vm55_vm1, %v1533_v13 }
 0x467   :  { %v1536_v15 = vpop.f32.mrb[10].mxu0  ;;  %1687 = vmatpush3.bf16.msra.mxu0 %v1686_v44 }
 0x468   :  { %v748_v17 = vpop.f32.mrb[11].mxu0  ;;  %1688 = vmatprep.subr.bf16.mxu0 %v1779_v18 }
 0x469   :  { %1562 = vmatprep.mubr.msk.f32.mxu0 %vm55_vm1, %v748_v17 }
 0x46a   :  { %1563 = vmatmul.mubr.msk.f32.gmra.mrb[14].mxu0 %vm55_vm1, %v1536_v15 }
 0x46b   :  { %1595 = vmatprep.mubr.msk.f32.mxu0 %vm1780_vm2, %v1781_v19  ;;  %1690 = vmatpush3.bf16.msra.mxu0 %v1689_v49 }
 0x539   :  { %v1561_v21 = vpop.f32.mrb[12].mxu0 }
 0x53a   :  { %v942_v22 = vadd.f32 %v1561_v21, %v1347_v20  ;;  %v936_v23 = vpop.f32.mrb[13].mxu0 }
 0x53b   :  { %v937_v24 = vadd.f32 %v1347_v20, %v936_v23 }
 0x53c   :  { %v960_v25 = vmax.f32 %v942_v22, 0.0 }
 0x53d   :  { %v959_v26 = vmax.f32 %v937_v24, 0.0  ;;  %v1564_v27 = vpop.f32.mrb[14].mxu0 }
 0x53e   :  { %v952_v28 = vadd.f32 %v1564_v27, %v1347_v20  ;;  %v946_v29 = vpop.f32.mrb[15].mxu0 }
 0x53f   :  { %v1674_v30 = vpack.c.bf16 %v960_v25, %v959_v26  ;;  %v947_v31 = vadd.f32 %v1347_v20, %v946_v29 }
 0x540   :  { %v962_v32 = vmax.f32 %v952_v28, 0.0 }
 0x541   :  { %v961_v33 = vmax.f32 %v947_v31, 0.0  ;;  %1675 = vmatpush3.bf16.msra.mxu1 %v1674_v30 }
 0x542   :  { %1676 = vmatprep.subr.bf16.mxu1 %v1779_v18 }
 0x543   :  { %v1677_v36 = vpack.c.bf16 %v962_v32, %v961_v33 }
 0x545   :  { %1678 = vmatpush3.bf16.msra.mxu1 %v1677_v36 }
 0x546   :  { %1679 = vmatprep.subr.bf16.mxu1 %v1779_v18 }
 0x548   :  { %1574 = vmatmul.mubr.msk.f32.vlgmr.msra.gmra.mrb[8].mxu1 %vm55_vm1, %v963_v37 }
 0x549   :  { %1681 = vmatpush3.bf16.msra.mxu1 %v1680_v38  ;;  %1584 = vmatprep.mubr.msk.f32.mxu1 %vm1780_vm2, %v1781_v19 }
 0x54a   :  { %1682 = vmatprep.subr.bf16.mxu1 %v1779_v18 }
 0x54d   :  { %1684 = vmatpush3.bf16.msra.mxu1 %v1683_v41 }
 0x54e   :  { %1691 = vmatprep.subr.bf16.mxu1 %v1779_v18 }
 0x61b   :  { %v1033_v45 = vpop.f32.mrb[8].mxu1 }
 0x61c   :  { %v1575_v46 = vpop.f32.mrb[9].mxu1  ;;  %1585 = vmatmul.mubr.msk.f32.vlgmr.msra.gmra.mrb[10].mxu1 %vm55_vm1, %v1033_v45 }
 0x61d   :  { %1606 = vmatprep.mubr.msk.f32.mxu1 %vm1780_vm2, %v1781_v19  ;;  %1693 = vmatpush3.bf16.msra.mxu1 %v1692_v52 }
 0x61e   :  { %1694 = vmatprep.subr.bf16.mxu1 %v1779_v18 }
 0x621   :  { %1696 = vmatpush3.bf16.msra.mxu1 %v1695_v61 }
 0x6ef   :  { %v1116_v54 = vpop.f32.mrb[10].mxu1 }
 0x6f0   :  { %v1117_v55 = vadd.f32 %v1353_v53, %v1116_v54  ;;  %v1586_v56 = vpop.f32.mrb[11].mxu1 }
 0x6f2   :  { %vm1120_vm3 = vcmp.ge.f32.partialorder %v1117_v55, 0.0  ;;  %v1121_v57 = vmul.f32 0.2, %v1117_v55 }
 0x6f4   :  { %v1122_v58 = vsel %vm1120_vm3, %v1117_v55, %v1121_v57 }
 0x6f5   :  { %1596 = vmatmul.mubr.msk.f32.vlgmr.msra.gmra.mrb[16].mxu0 %vm55_vm1, %v1122_v58 }
 0x7c8   :  { %v1202_v63 = vpop.f32.mrb[16].mxu0 }
 0x7c9   :  { %v1203_v0 = vadd.f32 %v1355_v62, %v1202_v63  ;;  %v1597_v1 = vpop.f32.mrb[17].mxu0 }
 0x7cb   :  { %vm1206_vm4 = vcmp.ge.f32.partialorder %v1203_v0, 0.0  ;;  %v1207_v2 = vmul.f32 0.2, %v1203_v0 }
 0x7cd   :  { %v1208_v3 = vsel %vm1206_vm4, %v1203_v0, %v1207_v2 }
 0x7ce   :  { %1607 = vmatmul.mubr.msk.f32.vlgmr.msra.gmra.mrb[12].mxu1 %vm55_vm1, %v1208_v3 }
 0x8a1   :  { %v1287_v5 = vpop.f32.mrb[12].mxu1 }
 0x8a2   :  { %v1288_v6 = vadd.f32 %v1357_v4, %v1287_v5  ;;  %v1608_v7 = vpop.f32.mrb[13].mxu1 }
 0x8a4   :  { %vm1291_vm5 = vcmp.ge.f32.partialorder %v1288_v6, 0.0  ;;  %v1292_v8 = vmul.f32 0.2, %v1288_v6 }
 0x8a6   :  { %v1293_v9 = vsel %vm1291_vm5, %v1288_v6, %v1292_v8 }
 0x8a7   :  { %1295 = vst.msk [vmem:[#allocation5] sm:$0xf] %vm1294_vm6, %v1293_v9 }
 0x8a8   :  { %1761 = shalt.err (!%p1758_p12)
}
 0x8a9   :  { %s1762_s11 = scalar_lea.hbm %s1987_s7, 64 }
 0x8aa   :  { %p1763_p13 = scmp.ne.s32.totalorder %s1987_s7, %s1762_s11  ;;  %p1766_p0 = scmp.lt.u32.totalorder %s1762_s11, %s1987_s7 }
 0x8ac   :  { %p1768_p1 = pnand %p1766_p0, %p1763_p13 }
 0x8ae   :  { %1771 = shalt.err (!%p1768_p1)
}
 0x8af   :  { %1305 = dma.vmem_to_hbm [thread:$0]  %s1303_s8, 64, %s1987_s7, [#allocation4]  }
 0x8b0   :  { %1774 = dma.done.wait [#allocation4], 64  }
 0x8b1   :  { %1775 = vsyncadd [#allocation4], 4294967232 }
 0x8b2   :  { %1309 = vsyncpa [#allocation3], 1 }
 0x8b3   :  { %1310 = vsyncpa [#allocation4], 1 }

</bundles_post_ra>
